<compile_context>
chip_gen: v7x
topology: tpu7x:2x2x1
jax: 0.10.0
libtpu: 0.0.40
codegen_flags: <defaults>
</compile_context>

<pallas_src>
import math

import jax
import jax.numpy as jnp
from jax.experimental import pallas as pl
from jax.experimental.pallas import tpu as pltpu

_EPS = 1e-5


# ----------------------------------------------------------------------------
# Fused InstanceNorm2d (affine=False, biased var) + AdaIN modulation kernel.
# Blocks: x (1, C_TILE, H*W); gamma/beta (1, C_TILE, 1).
# ----------------------------------------------------------------------------
def adain_kernel(x_ref, gamma_ref, beta_ref, o_ref):
    x = x_ref[...].astype(jnp.float32)                    # (1, CT, HW)
    inv_n = jnp.float32(1.0 / x_ref.shape[-1])

    # Single pass: sum and sum-of-squares (lane reductions -> XLU slot).
    s1 = jnp.sum(x, axis=-1, keepdims=True)               # (1, CT, 1)
    s2 = jnp.sum(x * x, axis=-1, keepdims=True)           # (1, CT, 1)
    mean = s1 * inv_n
    var = jnp.maximum(s2 * inv_n - mean * mean, 0.0)      # biased variance

    gamma = gamma_ref[...]                                 # (1, CT, 1) f32
    beta = beta_ref[...]                                   # (1, CT, 1) f32
    scale = gamma * jax.lax.rsqrt(var + _EPS)              # per-channel scalar
    shift = beta - mean * scale
    # One mul + one add per element; per-channel values broadcast along lanes.
    o_ref[...] = (x * scale + shift).astype(o_ref.dtype)


def _pick_c_tile(C, HW, itemsize, budget_bytes=3 * 1024 * 1024):
    """Largest channel tile whose (C_TILE, HW) block fits the VMEM budget.

    The tile must divide C and be either == C or a multiple of 8 (sublane
    rule for the second-to-last block dim).
    """
    if C * HW * itemsize <= budget_bytes:
        return C
    best = None
    for ct in range(8, C, 8):
        if C % ct == 0 and ct * HW * itemsize <= budget_bytes:
            best = ct
    if best is not None:
        return best
    return C  # fall back to full C (correct; may exceed budget for odd shapes)


def adain_apply(x, gamma, beta):
    """x: (B, C, H, W); gamma/beta: (B, C) float32 modulation params."""
    B, C, H, W = x.shape
    HW = H * W
    x2 = x.reshape(B, C, HW)                       # free: memory is contiguous
    g3 = gamma.astype(jnp.float32).reshape(B, C, 1)
    b3 = beta.astype(jnp.float32).reshape(B, C, 1)

    CT = _pick_c_tile(C, HW, jnp.dtype(x.dtype).itemsize)
    num_ct = C // CT

    out = pl.pallas_call(
        adain_kernel,
        out_shape=jax.ShapeDtypeStruct((B, C, HW), x.dtype),
        grid=(B, num_ct),
        in_specs=[
            pl.BlockSpec((1, CT, HW), lambda b, j: (b, j, 0)),
            pl.BlockSpec((1, CT, 1), lambda b, j: (b, j, 0)),
            pl.BlockSpec((1, CT, 1), lambda b, j: (b, j, 0)),
        ],
        out_specs=pl.BlockSpec((1, CT, HW), lambda b, j: (b, j, 0)),
        compiler_params=pltpu.CompilerParams(
            dimension_semantics=("parallel", "parallel"),
            vmem_limit_bytes=32 * 1024 * 1024,
        ),
    )(x2, g3, b3)
    return out.reshape(B, C, H, W)


# ----------------------------------------------------------------------------
# Module-equivalent wrapper
# ----------------------------------------------------------------------------
def adaptive_instance_norm(x, style, weight_orig, bias):
    """Forward pass of AdaptiveInstanceNorm.

    x:           (B, C, H, W)    feature map
    style:       (B, style_dim)  style vector
    weight_orig: (2C, style_dim) EqualLinear weight (pre equal-lr scaling)
    bias:        (2C,)           EqualLinear bias (unscaled)
    """
    C = x.shape[1]
    style_dim = weight_orig.shape[1]
    # EqualLR: weight = weight_orig * sqrt(2 / fan_in), fan_in = style_dim.
    eqlr = math.sqrt(2.0 / style_dim)
    # Tiny projection — plain XLA (a pallas_call here is pure overhead).
    st = (
        style.astype(jnp.float32)
        @ (weight_orig.astype(jnp.float32) * eqlr).T
        + bias.astype(jnp.float32)
    )                                              # (B, 2C)
    gamma = st[:, :C]
    beta = st[:, C:]
    return adain_apply(x, gamma, beta)


# ----------------------------------------------------------------------------
# Pure-JAX reference for validation
# ----------------------------------------------------------------------------
def adaptive_instance_norm_ref(x, style, weight_orig, bias):
    C = x.shape[1]
    style_dim = weight_orig.shape[1]
    eqlr = math.sqrt(2.0 / style_dim)
    st = style @ (weight_orig * eqlr).T + bias
    gamma = st[:, :C][:, :, None, None]
    beta = st[:, C:][:, :, None, None]
    mean = jnp.mean(x, axis=(2, 3), keepdims=True)
    var = jnp.mean((x - mean) ** 2, axis=(2, 3), keepdims=True)
    x_norm = (x - mean) / jnp.sqrt(var + _EPS)
    return gamma * x_norm + beta


if __name__ == "__main__":
    B, C, H, W = 2, 4, 16, 16
    style_dim = 8

    key = jax.random.PRNGKey(0)
    kx, ks, kw = jax.random.split(key, 3)

    x = jax.random.normal(kx, (B, C, H, W), dtype=jnp.float32)
    style = jax.random.normal(ks, (B, style_dim), dtype=jnp.float32)

    # EqualLinear params: weight ~ N(0,1); module sets both bias halves to 1.
    weight_orig = jax.random.normal(kw, (C * 2, style_dim), dtype=jnp.float32)
    bias = jnp.ones((C * 2,), dtype=jnp.float32)

    out = adaptive_instance_norm(x, style, weight_orig, bias)
    out = jax.block_until_ready(out)

    ref = adaptive_instance_norm_ref(x, style, weight_orig, bias)
    assert out.shape == (B, C, H, W)
    assert jnp.allclose(out, ref, atol=1e-4, rtol=1e-4), "mismatch vs reference"

    print("KERNEL_OK")
</pallas_src>

<mosaic_0001>
module attributes {stable_mosaic.version = 11 : i64} {
  func.func @adain_kernel(%arg0: i32, %arg1: i32, %arg2: memref<1x4x256xf32, #tpu.memory_space<vmem>>, %arg3: memref<1x4x1xf32, #tpu.memory_space<vmem>>, %arg4: memref<1x4x1xf32, #tpu.memory_space<vmem>>, %arg5: memref<1x4x256xf32, #tpu.memory_space<vmem>>) attributes {dimension_semantics = [#tpu.dimension_semantics<parallel>, #tpu.dimension_semantics<parallel>], iteration_bounds = array<i64: 2, 1>, scalar_prefetch = 0 : i64, scratch_operands = 0 : i64, tpu.core_type = #tpu.core_type<tc>, window_params = [{transform_indices = @transform_0, window_bounds = array<i64: 1, 4, 256>}, {transform_indices = @transform_1, window_bounds = array<i64: 1, 4, 1>}, {transform_indices = @transform_2, window_bounds = array<i64: 1, 4, 1>}, {transform_indices = @transform_3, window_bounds = array<i64: 1, 4, 256>}]} {
    %c0 = arith.constant 0 : index
    %c0_0 = arith.constant 0 : index
    %c0_1 = arith.constant 0 : index
    %0 = vector.load %arg2[%c0, %c0_0, %c0_1] : memref<1x4x256xf32, #tpu.memory_space<vmem>>, vector<1x4x256xf32>
    %cst = arith.constant dense<0.000000e+00> : vector<1x4xf32>
    %1 = vector.multi_reduction <add>, %0, %cst [2] : vector<1x4x256xf32> to vector<1x4xf32>
    %2 = vector.shape_cast %1 : vector<1x4xf32> to vector<1x4x1xf32>
    %3 = arith.mulf %0, %0 : vector<1x4x256xf32>
    %cst_2 = arith.constant dense<0.000000e+00> : vector<1x4xf32>
    %4 = vector.multi_reduction <add>, %3, %cst_2 [2] : vector<1x4x256xf32> to vector<1x4xf32>
    %5 = vector.shape_cast %4 : vector<1x4xf32> to vector<1x4x1xf32>
    %cst_3 = arith.constant 3.906250e-03 : f32
    %6 = vector.broadcast %cst_3 : f32 to vector<1x4x1xf32>
    %7 = arith.mulf %2, %6 : vector<1x4x1xf32>
    %cst_4 = arith.constant 3.906250e-03 : f32
    %8 = vector.broadcast %cst_4 : f32 to vector<1x4x1xf32>
    %9 = arith.mulf %5, %8 : vector<1x4x1xf32>
    %10 = arith.mulf %7, %7 : vector<1x4x1xf32>
    %11 = arith.subf %9, %10 : vector<1x4x1xf32>
    %cst_5 = arith.constant 0.000000e+00 : f32
    %12 = vector.broadcast %cst_5 : f32 to vector<1x4x1xf32>
    %13 = arith.maximumf %11, %12 : vector<1x4x1xf32>
    %c0_6 = arith.constant 0 : index
    %c0_7 = arith.constant 0 : index
    %c0_8 = arith.constant 0 : index
    %14 = vector.load %arg3[%c0_6, %c0_7, %c0_8] : memref<1x4x1xf32, #tpu.memory_space<vmem>>, vector<1x4x1xf32>
    %c0_9 = arith.constant 0 : index
    %c0_10 = arith.constant 0 : index
    %c0_11 = arith.constant 0 : index
    %15 = vector.load %arg4[%c0_9, %c0_10, %c0_11] : memref<1x4x1xf32, #tpu.memory_space<vmem>>, vector<1x4x1xf32>
    %cst_12 = arith.constant 9.99999974E-6 : f32
    %16 = vector.broadcast %cst_12 : f32 to vector<1x4x1xf32>
    %17 = arith.addf %13, %16 : vector<1x4x1xf32>
    %18 = math.rsqrt %17 : vector<1x4x1xf32>
    %19 = arith.mulf %14, %18 : vector<1x4x1xf32>
    %20 = arith.mulf %7, %19 : vector<1x4x1xf32>
    %21 = arith.subf %15, %20 : vector<1x4x1xf32>
    %22 = vector.broadcast %19 : vector<1x4x1xf32> to vector<1x4x256xf32>
    %23 = arith.mulf %0, %22 : vector<1x4x256xf32>
    %24 = vector.broadcast %21 : vector<1x4x1xf32> to vector<1x4x256xf32>
    %25 = arith.addf %23, %24 : vector<1x4x256xf32>
    %c0_13 = arith.constant 0 : index
    %c0_14 = arith.constant 0 : index
    %c0_15 = arith.constant 0 : index
    %26 = vector.load %arg5[%c0_13, %c0_14, %c0_15] : memref<1x4x256xf32, #tpu.memory_space<vmem>>, vector<1x4x256xf32>
    tpu.vector_store %arg5[%c0_13, %c0_14, %c0_15], %25 {strides = array<i32>} : memref<1x4x256xf32, #tpu.memory_space<vmem>>, vector<1x4x256xf32>,
    return
  }
  func.func @transform_0(%arg0: i32, %arg1: i32) -> (i32, i32, i32) {
    %c0_i32 = arith.constant 0 : i32
    %c0_i32_0 = arith.constant 0 : i32
    return %arg0, %arg1, %c0_i32 : i32, i32, i32
  }
  func.func @transform_1(%arg0: i32, %arg1: i32) -> (i32, i32, i32) {
    %c0_i32 = arith.constant 0 : i32
    %c0_i32_0 = arith.constant 0 : i32
    return %arg0, %arg1, %c0_i32 : i32, i32, i32
  }
  func.func @transform_2(%arg0: i32, %arg1: i32) -> (i32, i32, i32) {
    %c0_i32 = arith.constant 0 : i32
    %c0_i32_0 = arith.constant 0 : i32
    return %arg0, %arg1, %c0_i32 : i32, i32, i32
  }
  func.func @transform_3(%arg0: i32, %arg1: i32) -> (i32, i32, i32) {
    %c0_i32 = arith.constant 0 : i32
    %c0_i32_0 = arith.constant 0 : i32
    return %arg0, %arg1, %c0_i32 : i32, i32, i32
  }
}

</mosaic_0001>

<bundles_post_ra>
// kernel: tpu_custom_call.1
= control target key start
LH: loop header
LB: loop body
LE: loop exit
PB: predicated region body
PF: predicated region fallthrough
CT: control target
= control target key end

     0   :  { %8 = vsyncpa [#allocation3], 0  ;;  %s741_s0 = inlined_call_operand.vmem [shape: f32[2,4,256], index: 0, kind: input, shape index: {}]   ;;  %s742_s1 = inlined_call_operand.vmem [shape: f32[2,4,1], index: 1, kind: input, shape index: {}]   ;;  %s743_s2 = inlined_call_operand.vmem [shape: f32[2,4,1], index: 2, kind: input, shape index: {}]   ;;  %s744_s3 = inlined_call_operand.hbm [shape: f32[2,4,256], index: 3, kind: output, shape index: {}]  }
   0x1   :  { %10 = vsyncpa [#allocation3 + $0x1], 0  ;;  %s619_s12 = smov 0   ;;  %s621_s13 = smov 0  }
   0x2   :  { %s623_s14 = smov 0   ;;  %s625_s15 = smov 0  }
   0x3   :  { %s627_s16 = smov 0   ;;  %s629_s17 = smov 0  }
   0x4 LB: > { %s437_s18 = sadd.s32 4294967295, %s594_s17   ;;  %s438_s19 = sadd.s32 4294967294, %s594_s17   ;;  %s594_s17 = sphi %s629_s17, %s16_s17   ;;  %s590_s16 = sphi %s627_s16, %s751_s16   ;;  %s586_s15 = sphi %s625_s15, %s750_s15   ;;  %s582_s14 = sphi %s623_s14, %s749_s14   ;;  %s578_s13 = sphi %s621_s13, %s748_s13   ;;  %s574_s12 = sphi %s619_s12, %s747_s12  }
   0x5   : > { %s28_s20 = sadd.s32 1, %s590_s16  ;;  %s121_s21 = sadd.s32 1, %s582_s14 }
   0x6   : > { %p30_p0 = scmp.ge.s32.totalorder %s28_s20, 2  ;;  %p131_p1 = scmp.ne.s32.totalorder %s582_s14, %s578_s13 }
   0x7   : > { %p132_p2 = scmp.eq.s32.totalorder %s437_s18, 1  ;;  %p137_p3 = scmp.ne.s32.totalorder %s578_s13, %s574_s12 }
   0x8   : > { %s753_s20 = smov (%p30_p0, %s28_s20), 0  ;;  %p138_p5 = scmp.eq.s32.totalorder %s438_s19, 1 }
   0x9   : > { %p659_p4 = por %p132_p2, %p131_p1  ;;  %s116_s23 = ssub.s32 %s590_s16, %s753_s20 }
   0xa   : > { %p441_p6 = scmp.ge.s32.totalorder %s594_s17, 1  ;;  %p119_p7 = scmp.eq.s32.totalorder %s116_s23, 0 }
   0xb   : > { %p666_p8 = por %p138_p5, %p137_p3  ;;  %p188_p9 = scmp.lt.s32.totalorder %s594_s17, 3 }
   0xc   : > { %s672_s25 = scalar_select %p119_p7, %s582_s14, %s121_s21  }
   0xd   : > { %p189_p10 = pnand %p441_p6, %p188_p9 }
   0xe   : > { %p230_p11 = scmp.lt.s32.totalorder (!%p189_p10), %s586_s15, 1  ;;  %vm257_vm0 = vcmask (!%p189_p10), 1043456   ;;  %v596_v10 = vmov (!%p189_p10), 0   ;;  %v597_v25 = vmov (!%p189_p10), 839922192   ;;  %v291_v27 = vlaneseq (!%p189_p10)  ;;  %s227_s11 = sand.u32 (!%p189_p10), 1, %s578_s13  }
   0xf   : > { %192 = sbr.rel (%p189_p10) target bundleno = 349 (0x15d), region = 32  ;;  %511 = vset.pattern.permute.xlu1 (!%p189_p10), %v596_v10  ;;  %512 = vset.pattern.permute.xlu0 (!%p189_p10), %v596_v10  ;;  %v289_v26 = vunpack.c.l.s4 (!%p189_p10), %v597_v25  ;;  %s442_s18 = sshll.u32 (!%p189_p10), %s227_s11, 3 }
  0x10   : > { %v292_v29 = vshrl.u32 (!%p189_p10), %v291_v27, 7  ;;  %s453_s19 = sshll.u32 (!%p189_p10), %s586_s15, 7  ;;  %s229_s21 = scalar_lea.vmem (!%p189_p10), [#allocation2], %s442_s18 }
  0x11   : > { %v290_v28 = vunpack.c.0.s8 (!%p189_p10), %v289_v26  ;;  %s328_s23 = sshll.u32 (!%p189_p10), %s229_s21, 4  ;;  %s694_s28 = scalar_lea.hbm (!%p189_p10), %s744_s3, %s453_s19  ;;  %s696_s23 = int_to_ptr.vmem [resolvable:$true] %s328_s23 }
  0x12   : > { %s312_s29 = scalar_lea.sflag (!%p189_p10), [#allocation3], %s227_s11 }
  0x13   : > { %v293_v30 = vsub.s32 (!%p189_p10), %v290_v28, %v292_v29 }
  0x16   : > { %s676_s26 = scalar_select %p230_p11, %s586_s15, 1 }
  0x17   : > { %s598_s15 = smov [#allocation2]  }
  0x18   : > { %s452_s27 = sshll.u32 %s676_s26, 3  ;;  %s445_s4 = sshll.u32 %s676_s26, 2 }
  0x19   : > { %s238_s30 = scalar_lea.vmem %s741_s0, %s452_s27  ;;  %s245_s7 = scalar_lea.vmem %s742_s1, %s445_s4 }
  0x1a   : > { %v253_v0 = vld [vmem:[%s238_s30] sm:$0xff]  ;;  %s252_s10 = scalar_lea.vmem %s743_s2, %s445_s4  ;;  %s516_s30 = scalar_lea.vmem %s696_s23, 128 }
  0x1b   : > { %v255_v1 = vcombine.high %v253_v0, %v253_v0  ;;  %v258_v2 = vsel %vm257_vm0, %v253_v0, 0.0  ;;  %v263_v3 = vmul.f32 %v253_v0, %v253_v0  ;;  %v277_v19 = vld [vmem:[%s245_s7] sm:$0xf]  ;;  %p517_p12 = scmp.ne.s32.totalorder %s696_s23, %s516_s30  ;;  %s520_s4 = sshll.u32 %s598_s15, 4  ;;  %s521_s4 = int_to_ptr.vmem [resolvable:$false] %s520_s4 }
  0x1c   : > { %v278_v22 = vld [vmem:[%s252_s10] sm:$0xf]  ;;  %s522_s5 = scalar_lea.vmem %s521_s4, 256  ;;  %p523_p1 = scmp.lt.s32.totalorder %s696_s23, %s521_s4 }
  0x1d   : > { %v259_v4 = vsel %vm257_vm0, %v255_v1, 0.0  ;;  %v265_v5 = vcombine.high %v263_v3, %v263_v3  ;;  %v267_v6 = vsel %vm257_vm0, %v263_v3, 0.0  ;;  %p518_p13 = pnand %p517_p12, %p659_p4  ;;  %p524_p2 = scmp.lt.s32.totalorder %s522_s5, %s516_s30 }
  0x1e   : > { %v260_v7 = vadd.f32 %v259_v4, %v258_v2 }
  0x1f   : > { %v268_v8 = vsel %vm257_vm0, %v265_v5, 0.0  ;;  %p519_p0 = pneg %p518_p13  ;;  %p525_p3 = por %p524_p2, %p523_p1 }
  0x20   : > { %261 = vadd.xlane.f32.xlu0 %v260_v7  ;;  %v269_v9 = vadd.f32 %v268_v8, %v267_v6 }
  0x21   : > { %p526_p5 = pnand %p525_p3, %p519_p0 }
  0x24   : > { %270 = vadd.xlane.f32.xlu0 %v269_v9 }
  0xad   : > { %v262_v11 = vpop.xlane.xlu0 %261 }
  0xae   : > { %v272_v12 = vmul.f32 0.00390625, %v262_v11 }
  0xb0   : > { %v274_v14 = vmul.f32 %v272_v12, %v272_v12 }
  0xb1   : > { %v271_v13 = vpop.xlane.xlu0 %270 }
  0xb2   : > { %v273_v15 = vmul.f32 0.00390625, %v271_v13 }
  0xb4   : > { %v275_v16 = vsub.f32 %v273_v15, %v274_v14 }
  0xb6   : > { %v276_v17 = vmax.f32 %v275_v16, 0.0 }
  0xb8   : > { %v279_v18 = vadd.f32 1e-05, %v276_v17 }
  0xba   : > { %514 = vrsqrt.f32 %v279_v18 }
  0xc4   : > { %v515_v20 = vpop.eup %514 }
  0xc5   : > { %v281_v21 = vmul.f32 %v515_v20, %v277_v19 }
  0xc7   : > { %286 = vperm.xlu1 %511, %v281_v21   ;;  %v282_v23 = vmul.f32 %v281_v21, %v272_v12 }
  0xc9   : > { %v283_v24 = vsub.f32 %v278_v22, %v282_v23 }
  0xcb   : > { %299 = vperm.xlu1 %511, %v283_v24  }
 0x146   : > { %v287_v31 = vpop.permute.xlu1 %286 }
 0x147   : > { %v294_v32 = vrot.slane %v287_v31, %v293_v30 }
 0x149   : > { %v296_v34 = vmul.f32 %v294_v32, %v253_v0 }
 0x14a   : > { %v300_v33 = vpop.permute.xlu1 %299 }
 0x14b   : > { %v307_v35 = vrot.slane %v300_v33, %v293_v30 }
 0x14d   : > { %v309_v36 = vadd.f32 %v307_v35, %v296_v34 }
 0x14f   : > { %310 = vst [vmem:[%s229_s21] sm:$0xff] %v309_v36 }
 0x150   : > { %529 = shalt.err (!%p526_p5)
}
 0x151   : > { %s530_s6 = scalar_lea.hbm %s694_s28, 128  ;;  %s534_s9 = scalar_lea.hbm %s744_s3, 256 }
 0x152   : > { %p531_p6 = scmp.ne.s32.totalorder %s694_s28, %s530_s6  ;;  %p535_p10 = scmp.lt.u32.totalorder %s694_s28, %s744_s3 }
 0x153   : > { %p536_p11 = scmp.lt.u32.totalorder %s534_s9, %s530_s6  ;;  %p538_p13 = scmp.lt.u32.totalorder %s530_s6, %s694_s28 }
 0x154   : > { %p532_p7 = pnand %p531_p6, %p659_p4 }
 0x155   : > { %p537_p12 = por %p536_p11, %p535_p10 }
 0x156   : > { %p533_p9 = pneg %p532_p7 }
 0x157   : > { %p539_p0 = por %p538_p13, %p537_p12 }
 0x159   : > { %p540_p1 = pnand %p539_p0, %p533_p9 }
 0x15b   : > { %543 = shalt.err (!%p540_p1)
}
 0x15c   : > { %454 = dma.vmem_to_hbm [thread:$0]  (%p659_p4), %s696_s23, 128, %s694_s28, %s312_s29  }
 0x15d PF: > { %p460_p2 = scmp.ge.s32.totalorder %s594_s17, 2  ;;  %s340_s18 = sand.u32 1, %s574_s12  }
 0x15e   : > { %s341_s19 = scalar_lea.sflag [#allocation3], %s340_s18 }
 0x15f   : > { %p457_p3 = pnand %p460_p2, %p666_p8 }
 0x161   : > { %569 = dma.done.wait (!%p457_p3), %s341_s19, 128  }
 0x162   : > { %571 = vsyncadd (!%p457_p3), %s341_s19, 4294967168  ;;  %s16_s17 = sadd.s32 1, %s594_s17   ;;  %s747_s12 = smov %s578_s13 }
 0x163   : > { %p13_p5 = scmp.ge.s32.totalorder %s16_s17, 4   ;;  %s748_s13 = smov %s582_s14 }
 0x164   : > { %s749_s14 = smov %s672_s25  ;;  %s750_s15 = smov %s590_s16 }
 0x165   : > { %s751_s16 = smov %s753_s20  ;;  %15 = sbr.rel (!%p13_p5) target bundleno = 4 (0x4), region = 73 }
 0x16c   :  { %346 = vsyncpa [#allocation3], 1 }
 0x16d   :  { %348 = vsyncpa [#allocation3 + $0x1], 1 }

</bundles_post_ra>
